<compile_context>
chip_gen: v5e
topology: v5e:2x2
jax: 0.10.0
libtpu: 0.0.40
codegen_flags: <defaults>
</compile_context>

<pallas_src>
import math
from functools import partial

import jax
import jax.numpy as jnp
from jax.experimental import pallas as pl
from jax.experimental.pallas import tpu as pltpu


def _round_up(x, m):
    return ((x + m - 1) // m) * m


def make_rnn_kernel(num_layers, T, Bp, Hp):
    """Kernel ref order:
      x_ref      (T*Bp, Ip)  bf16  time-major, zero-padded input
      wih0_ref   (Ip, Hp)    bf16  layer-0 W_ih^T
      w_ref      (2L-1, Hp, Hp) bf16  [whh_0, wih_1, whh_1, wih_2, whh_2, ...]
      bias_ref   (L, Hp)     f32   per-layer folded bias (b_ih + b_hh)
      fcw_ref    (Hp, Op)    bf16  final Linear weight^T
      fcb_ref    (1, Op)     f32   final Linear bias
      out_ref    (Bp, Op)    f32
      ih_a, ih_b (T*Bp, Hp)  f32   ping-pong slabs of hoisted ih pre-activations
    """

    def kernel(x_ref, wih0_ref, w_ref, bias_ref, fcw_ref, fcb_ref,
               out_ref, ih_a_ref, ih_b_ref):
        ih_slabs = [ih_a_ref, ih_b_ref]

        # Layer 0: hoisted input->hidden matmul for ALL timesteps at once
        # (bf16 operands, f32 accumulation, bias folded in).
        ih_slabs[0][...] = (
            jnp.dot(x_ref[...], wih0_ref[...],
                    preferred_element_type=jnp.float32)
            + bias_ref[0:1, :]
        )

        h_last = None
        for layer in range(num_layers):
            ih_cur = ih_slabs[layer % 2]
            ih_nxt = ih_slabs[(layer + 1) % 2]
            last_layer = layer == num_layers - 1

            whh = w_ref[2 * layer]                             # (Hp, Hp) bf16
            if not last_layer:
                wih_next = w_ref[2 * layer + 1]                # (Hp, Hp) bf16
                bias_next = bias_ref[layer + 1:layer + 2, :]   # (1, Hp)  f32

            # Serial recurrence: per step only a (Bp,Hp)@(Hp,Hp) bf16 matmul,
            # f32 add + tanh.  T is small & static -> fully unrolled with
            # static, (8,128)-aligned slices.  Initial hidden state is zero,
            # so the t==0 matmul is skipped.
            h16 = None
            for t in range(T):
                if t == 0:
                    pre = ih_cur[0:Bp, :]
                else:
                    pre = ih_cur[t * Bp:(t + 1) * Bp, :] + jnp.dot(
                        h16, whh, preferred_element_type=jnp.float32)
                h = jnp.tanh(pre)                      # f32 VPU/EUP
                h16 = h.astype(jnp.bfloat16)
                if not last_layer:
                    # Pipeline: next layer's ih pre-activation for timestep t,
                    # computed while this layer's recurrence continues.
                    ih_nxt[t * Bp:(t + 1) * Bp, :] = (
                        jnp.dot(h16, wih_next,
                                preferred_element_type=jnp.float32)
                        + bias_next
                    )
            h_last = h16

        # Final Linear on the last timestep of the last layer (lane-dense out).
        out_ref[...] = (
            jnp.dot(h_last, fcw_ref[...], preferred_element_type=jnp.float32)
            + fcb_ref[...]
        )

    return kernel


def prepare_params(params, input_size, hidden_size, num_layers, output_size):
    """One-time weight prep: transpose to (in, H) layouts, zero-pad to
    (8,128)-tiled shapes, cast matmul weights to bf16, and pack everything
    into a few contiguous slabs (fewer, larger prologue DMAs)."""
    Hp = _round_up(hidden_size, 128)
    Ip = _round_up(input_size, 128)
    Op = _round_up(output_size, 128)

    # Layer-0 W_ih^T kept separate (its row count Ip may differ from Hp).
    wih0_t = (jnp.zeros((Ip, Hp), jnp.float32)
              .at[:input_size, :hidden_size]
              .set(jnp.transpose(params["w_ih_0"]).astype(jnp.float32))
              .astype(jnp.bfloat16))

    # Single contiguous slab: [whh_0, wih_1, whh_1, wih_2, whh_2, ...].
    n_slabs = 2 * num_layers - 1
    w_slab = jnp.zeros((n_slabs, Hp, Hp), jnp.float32)
    for l in range(num_layers):
        whh_t = jnp.transpose(params[f"w_hh_{l}"]).astype(jnp.float32)
        w_slab = w_slab.at[2 * l, :hidden_size, :hidden_size].set(whh_t)
        if l >= 1:
            wih_t = jnp.transpose(params[f"w_ih_{l}"]).astype(jnp.float32)
            w_slab = w_slab.at[2 * l - 1, :hidden_size, :hidden_size].set(wih_t)
    w_slab = w_slab.astype(jnp.bfloat16)

    # Folded biases (b_ih + b_hh), kept in f32 (added post-matmul in f32).
    bias_slab = jnp.zeros((num_layers, Hp), jnp.float32)
    for l in range(num_layers):
        bias_slab = bias_slab.at[l, :hidden_size].set(
            (params[f"b_ih_{l}"] + params[f"b_hh_{l}"]).astype(jnp.float32))

    fcw_t = (jnp.zeros((Hp, Op), jnp.float32)
             .at[:hidden_size, :output_size]
             .set(jnp.transpose(params["fc_w"]).astype(jnp.float32))
             .astype(jnp.bfloat16))
    fcb = jnp.zeros((1, Op), jnp.float32).at[0, :output_size].set(
        params["fc_b"].astype(jnp.float32))

    return (wih0_t, w_slab, bias_slab, fcw_t, fcb)


@partial(jax.jit, static_argnames=("hidden_size", "num_layers", "output_size"))
def rnn_model_forward(x, prepped_params, hidden_size, num_layers, output_size):
    """x: (B, T, input_size) float32 (batch_first, same as the PyTorch module).
    prepped_params: output of prepare_params (packed/transposed/padded)."""
    B, T, I = x.shape
    Bp = _round_up(max(B, 8), 8)
    Ip = _round_up(I, 128)
    Hp = _round_up(hidden_size, 128)
    Op = _round_up(output_size, 128)

    # (B,T,I) -> time-major (T,B,I), zero-pad to (T,Bp,Ip), flatten to a
    # lane/sublane-aligned (T*Bp, Ip) slab, cast to bf16 for the MXU.
    x_tm = jnp.transpose(x, (1, 0, 2)).astype(jnp.float32)
    x_pad = jnp.zeros((T, Bp, Ip), jnp.float32).at[:, :B, :I].set(x_tm)
    x_flat = x_pad.reshape(T * Bp, Ip).astype(jnp.bfloat16)

    kernel = make_rnn_kernel(num_layers, T, Bp, Hp)
    vmem_spec = pl.BlockSpec(memory_space=pltpu.MemorySpace.VMEM)
    args = (x_flat,) + tuple(prepped_params)

    # Whole problem is tiny and fully VMEM-resident, so no grid is needed.
    out_pad = pl.pallas_call(
        kernel,
        out_shape=jax.ShapeDtypeStruct((Bp, Op), jnp.float32),
        in_specs=[vmem_spec] * len(args),
        out_specs=vmem_spec,
        scratch_shapes=[
            pltpu.VMEM((T * Bp, Hp), jnp.float32),  # ih slab (ping)
            pltpu.VMEM((T * Bp, Hp), jnp.float32),  # ih slab (pong)
        ],
    )(*args)

    return out_pad[:B, :output_size]


def rnn_model_ref(x, params, hidden_size, num_layers):
    """Pure-JAX reference matching torch.nn.RNN(tanh) + Linear semantics."""
    B, T, _ = x.shape
    H = hidden_size
    layer_in = x
    for l in range(num_layers):
        wih, whh = params[f"w_ih_{l}"], params[f"w_hh_{l}"]
        bih, bhh = params[f"b_ih_{l}"], params[f"b_hh_{l}"]
        h = jnp.zeros((B, H), jnp.float32)
        outs = []
        for t in range(T):
            h = jnp.tanh(layer_in[:, t, :] @ wih.T + bih + h @ whh.T + bhh)
            outs.append(h)
        layer_in = jnp.stack(outs, axis=1)
    last = layer_in[:, -1, :]
    return last @ params["fc_w"].T + params["fc_b"]


def init_params(key, input_size, hidden_size, num_layers, output_size):
    """Deterministic init mimicking PyTorch's uniform(-1/sqrt(H), 1/sqrt(H))."""
    params = {}
    k = 1.0 / math.sqrt(hidden_size)
    for l in range(num_layers):
        in_dim = input_size if l == 0 else hidden_size
        key, k1, k2, k3, k4 = jax.random.split(key, 5)
        params[f"w_ih_{l}"] = jax.random.uniform(
            k1, (hidden_size, in_dim), jnp.float32, -k, k)
        params[f"w_hh_{l}"] = jax.random.uniform(
            k2, (hidden_size, hidden_size), jnp.float32, -k, k)
        params[f"b_ih_{l}"] = jax.random.uniform(
            k3, (hidden_size,), jnp.float32, -k, k)
        params[f"b_hh_{l}"] = jax.random.uniform(
            k4, (hidden_size,), jnp.float32, -k, k)
    key, k1, k2 = jax.random.split(key, 3)
    params["fc_w"] = jax.random.uniform(
        k1, (output_size, hidden_size), jnp.float32, -k, k)
    params["fc_b"] = jax.random.uniform(
        k2, (output_size,), jnp.float32, -k, k)
    return params


if __name__ == "__main__":
    B, T = 2, 8
    INPUT_SIZE, HIDDEN_SIZE, NUM_LAYERS, OUTPUT_SIZE = 4, 32, 2, 3

    key = jax.random.PRNGKey(0)
    key, xkey = jax.random.split(key)
    x = jax.random.normal(xkey, (B, T, INPUT_SIZE), jnp.float32)
    params = init_params(key, INPUT_SIZE, HIDDEN_SIZE, NUM_LAYERS, OUTPUT_SIZE)

    # Weight transpose/pack/pad + bf16 cast done once, outside the jit'd forward.
    prepped = prepare_params(params, INPUT_SIZE, HIDDEN_SIZE, NUM_LAYERS,
                             OUTPUT_SIZE)

    out = rnn_model_forward(x, prepped, HIDDEN_SIZE, NUM_LAYERS, OUTPUT_SIZE)
    out = jax.block_until_ready(out)

    ref = rnn_model_ref(x, params, HIDDEN_SIZE, NUM_LAYERS)
    assert out.shape == (B, OUTPUT_SIZE)
    # Tolerance loosened vs the f32 reference because matmul operands are bf16
    # (accumulation stays f32 via preferred_element_type).
    assert jnp.allclose(out, ref, atol=3e-2, rtol=3e-2), (out, ref)

    print("KERNEL_OK")
</pallas_src>

<mosaic_0001>
module attributes {stable_mosaic.version = 11 : i64} {
  func.func @kernel(%arg0: memref<64x128xbf16, #tpu.memory_space<vmem>>, %arg1: memref<128x128xbf16, #tpu.memory_space<vmem>>, %arg2: memref<3x128x128xbf16, #tpu.memory_space<vmem>>, %arg3: memref<2x128xf32, #tpu.memory_space<vmem>>, %arg4: memref<128x128xbf16, #tpu.memory_space<vmem>>, %arg5: memref<1x128xf32, #tpu.memory_space<vmem>>, %arg6: memref<8x128xf32, #tpu.memory_space<vmem>>, %arg7: memref<64x128xf32, #tpu.memory_space<vmem>>, %arg8: memref<64x128xf32, #tpu.memory_space<vmem>>) attributes {dimension_semantics = [], scalar_prefetch = 0 : i64, scratch_operands = 2 : i64, tpu.core_type = #tpu.core_type<tc>} {
    %c0 = arith.constant 0 : index
    %c0_0 = arith.constant 0 : index
    %0 = vector.load %arg0[%c0, %c0_0] : memref<64x128xbf16, #tpu.memory_space<vmem>>, vector<64x128xbf16>
    %c0_1 = arith.constant 0 : index
    %c0_2 = arith.constant 0 : index
    %1 = vector.load %arg1[%c0_1, %c0_2] : memref<128x128xbf16, #tpu.memory_space<vmem>>, vector<128x128xbf16>
    %cst = arith.constant dense<0.000000e+00> : vector<64x128xf32>
    %2 = tpu.matmul %0, %1, %cst {dimension_numbers = #tpu.dot_dimension_numbers<[1], [0], [0], [1], [0, 0, 1, 1], [], []>} : vector<64x128xbf16>, vector<128x128xbf16>, vector<64x128xf32> -> vector<64x128xf32>
    %c0_3 = arith.constant 0 : index
    %c0_4 = arith.constant 0 : index
    %3 = vector.load %arg3[%c0_3, %c0_4] : memref<2x128xf32, #tpu.memory_space<vmem>>, vector<1x128xf32>
    %4 = vector.broadcast %3 : vector<1x128xf32> to vector<64x128xf32>
    %5 = arith.addf %2, %4 : vector<64x128xf32>
    %c0_5 = arith.constant 0 : index
    %c0_6 = arith.constant 0 : index
    %6 = vector.load %arg7[%c0_5, %c0_6] : memref<64x128xf32, #tpu.memory_space<vmem>>, vector<64x128xf32>
    tpu.vector_store %arg7[%c0_5, %c0_6], %5 {strides = array<i32>} : memref<64x128xf32, #tpu.memory_space<vmem>>, vector<64x128xf32>,
    %c0_7 = arith.constant 0 : index
    %c0_8 = arith.constant 0 : index
    %c0_9 = arith.constant 0 : index
    %7 = vector.load %arg2[%c0_7, %c0_8, %c0_9] : memref<3x128x128xbf16, #tpu.memory_space<vmem>>, vector<1x128x128xbf16>
    %8 = vector.shape_cast %7 : vector<1x128x128xbf16> to vector<128x128xbf16>
    %c1 = arith.constant 1 : index
    %c0_10 = arith.constant 0 : index
    %c0_11 = arith.constant 0 : index
    %9 = vector.load %arg2[%c1, %c0_10, %c0_11] : memref<3x128x128xbf16, #tpu.memory_space<vmem>>, vector<1x128x128xbf16>
    %10 = vector.shape_cast %9 : vector<1x128x128xbf16> to vector<128x128xbf16>
    %c1_12 = arith.constant 1 : index
    %c0_13 = arith.constant 0 : index
    %11 = vector.load %arg3[%c1_12, %c0_13] : memref<2x128xf32, #tpu.memory_space<vmem>>, vector<1x128xf32>
    %c0_14 = arith.constant 0 : index
    %c0_15 = arith.constant 0 : index
    %12 = vector.load %arg7[%c0_14, %c0_15] : memref<64x128xf32, #tpu.memory_space<vmem>>, vector<8x128xf32>
    %13 = math.tanh %12 : vector<8x128xf32>
    %14 = arith.truncf %13 : vector<8x128xf32> to vector<8x128xbf16>
    %cst_16 = arith.constant dense<0.000000e+00> : vector<8x128xf32>
    %15 = tpu.matmul %14, %10, %cst_16 {dimension_numbers = #tpu.dot_dimension_numbers<[1], [0], [0], [1], [0, 0, 1, 1], [], []>} : vector<8x128xbf16>, vector<128x128xbf16>, vector<8x128xf32> -> vector<8x128xf32>
    %16 = vector.broadcast %11 : vector<1x128xf32> to vector<8x128xf32>
    %17 = arith.addf %15, %16 : vector<8x128xf32>
    %c0_17 = arith.constant 0 : index
    %c0_18 = arith.constant 0 : index
    %18 = vector.load %arg8[%c0_17, %c0_18] : memref<64x128xf32, #tpu.memory_space<vmem>>, vector<8x128xf32>
    tpu.vector_store %arg8[%c0_17, %c0_18], %17 {strides = array<i32>} : memref<64x128xf32, #tpu.memory_space<vmem>>, vector<8x128xf32>,
    %c8 = arith.constant 8 : index
    %c0_19 = arith.constant 0 : index
    %19 = vector.load %arg7[%c8, %c0_19] : memref<64x128xf32, #tpu.memory_space<vmem>>, vector<8x128xf32>
    %cst_20 = arith.constant dense<0.000000e+00> : vector<8x128xf32>
    %20 = tpu.matmul %14, %8, %cst_20 {dimension_numbers = #tpu.dot_dimension_numbers<[1], [0], [0], [1], [0, 0, 1, 1], [], []>} : vector<8x128xbf16>, vector<128x128xbf16>, vector<8x128xf32> -> vector<8x128xf32>
    %21 = arith.addf %19, %20 : vector<8x128xf32>
    %22 = math.tanh %21 : vector<8x128xf32>
    %23 = arith.truncf %22 : vector<8x128xf32> to vector<8x128xbf16>
    %cst_21 = arith.constant dense<0.000000e+00> : vector<8x128xf32>
    %24 = tpu.matmul %23, %10, %cst_21 {dimension_numbers = #tpu.dot_dimension_numbers<[1], [0], [0], [1], [0, 0, 1, 1], [], []>} : vector<8x128xbf16>, vector<128x128xbf16>, vector<8x128xf32> -> vector<8x128xf32>
    %25 = vector.broadcast %11 : vector<1x128xf32> to vector<8x128xf32>
    %26 = arith.addf %24, %25 : vector<8x128xf32>
    %c8_22 = arith.constant 8 : index
    %c0_23 = arith.constant 0 : index
    %27 = vector.load %arg8[%c8_22, %c0_23] : memref<64x128xf32, #tpu.memory_space<vmem>>, vector<8x128xf32>
    tpu.vector_store %arg8[%c8_22, %c0_23], %26 {strides = array<i32>} : memref<64x128xf32, #tpu.memory_space<vmem>>, vector<8x128xf32>,
    %c16 = arith.constant 16 : index
    %c0_24 = arith.constant 0 : index
    %28 = vector.load %arg7[%c16, %c0_24] : memref<64x128xf32, #tpu.memory_space<vmem>>, vector<8x128xf32>
    %cst_25 = arith.constant dense<0.000000e+00> : vector<8x128xf32>
    %29 = tpu.matmul %23, %8, %cst_25 {dimension_numbers = #tpu.dot_dimension_numbers<[1], [0], [0], [1], [0, 0, 1, 1], [], []>} : vector<8x128xbf16>, vector<128x128xbf16>, vector<8x128xf32> -> vector<8x128xf32>
    %30 = arith.addf %28, %29 : vector<8x128xf32>
    %31 = math.tanh %30 : vector<8x128xf32>
    %32 = arith.truncf %31 : vector<8x128xf32> to vector<8x128xbf16>
    %cst_26 = arith.constant dense<0.000000e+00> : vector<8x128xf32>
    %33 = tpu.matmul %32, %10, %cst_26 {dimension_numbers = #tpu.dot_dimension_numbers<[1], [0], [0], [1], [0, 0, 1, 1], [], []>} : vector<8x128xbf16>, vector<128x128xbf16>, vector<8x128xf32> -> vector<8x128xf32>
    %34 = vector.broadcast %11 : vector<1x128xf32> to vector<8x128xf32>
    %35 = arith.addf %33, %34 : vector<8x128xf32>
    %c16_27 = arith.constant 16 : index
    %c0_28 = arith.constant 0 : index
    %36 = vector.load %arg8[%c16_27, %c0_28] : memref<64x128xf32, #tpu.memory_space<vmem>>, vector<8x128xf32>
    tpu.vector_store %arg8[%c16_27, %c0_28], %35 {strides = array<i32>} : memref<64x128xf32, #tpu.memory_space<vmem>>, vector<8x128xf32>,
    %c24 = arith.constant 24 : index
    %c0_29 = arith.constant 0 : index
    %37 = vector.load %arg7[%c24, %c0_29] : memref<64x128xf32, #tpu.memory_space<vmem>>, vector<8x128xf32>
    %cst_30 = arith.constant dense<0.000000e+00> : vector<8x128xf32>
    %38 = tpu.matmul %32, %8, %cst_30 {dimension_numbers = #tpu.dot_dimension_numbers<[1], [0], [0], [1], [0, 0, 1, 1], [], []>} : vector<8x128xbf16>, vector<128x128xbf16>, vector<8x128xf32> -> vector<8x128xf32>
    %39 = arith.addf %37, %38 : vector<8x128xf32>
    %40 = math.tanh %39 : vector<8x128xf32>
    %41 = arith.truncf %40 : vector<8x128xf32> to vector<8x128xbf16>
    %cst_31 = arith.constant dense<0.000000e+00> : vector<8x128xf32>
    %42 = tpu.matmul %41, %10, %cst_31 {dimension_numbers = #tpu.dot_dimension_numbers<[1], [0], [0], [1], [0, 0, 1, 1], [], []>} : vector<8x128xbf16>, vector<128x128xbf16>, vector<8x128xf32> -> vector<8x128xf32>
    %43 = vector.broadcast %11 : vector<1x128xf32> to vector<8x128xf32>
    %44 = arith.addf %42, %43 : vector<8x128xf32>
    %c24_32 = arith.constant 24 : index
    %c0_33 = arith.constant 0 : index
    %45 = vector.load %arg8[%c24_32, %c0_33] : memref<64x128xf32, #tpu.memory_space<vmem>>, vector<8x128xf32>
    tpu.vector_store %arg8[%c24_32, %c0_33], %44 {strides = array<i32>} : memref<64x128xf32, #tpu.memory_space<vmem>>, vector<8x128xf32>,
    %c32 = arith.constant 32 : index
    %c0_34 = arith.constant 0 : index
    %46 = vector.load %arg7[%c32, %c0_34] : memref<64x128xf32, #tpu.memory_space<vmem>>, vector<8x128xf32>
    %cst_35 = arith.constant dense<0.000000e+00> : vector<8x128xf32>
    %47 = tpu.matmul %41, %8, %cst_35 {dimension_numbers = #tpu.dot_dimension_numbers<[1], [0], [0], [1], [0, 0, 1, 1], [], []>} : vector<8x128xbf16>, vector<128x128xbf16>, vector<8x128xf32> -> vector<8x128xf32>
    %48 = arith.addf %46, %47 : vector<8x128xf32>
    %49 = math.tanh %48 : vector<8x128xf32>
    %50 = arith.truncf %49 : vector<8x128xf32> to vector<8x128xbf16>
    %cst_36 = arith.constant dense<0.000000e+00> : vector<8x128xf32>
    %51 = tpu.matmul %50, %10, %cst_36 {dimension_numbers = #tpu.dot_dimension_numbers<[1], [0], [0], [1], [0, 0, 1, 1], [], []>} : vector<8x128xbf16>, vector<128x128xbf16>, vector<8x128xf32> -> vector<8x128xf32>
    %52 = vector.broadcast %11 : vector<1x128xf32> to vector<8x128xf32>
    %53 = arith.addf %51, %52 : vector<8x128xf32>
    %c32_37 = arith.constant 32 : index
    %c0_38 = arith.constant 0 : index
    %54 = vector.load %arg8[%c32_37, %c0_38] : memref<64x128xf32, #tpu.memory_space<vmem>>, vector<8x128xf32>
    tpu.vector_store %arg8[%c32_37, %c0_38], %53 {strides = array<i32>} : memref<64x128xf32, #tpu.memory_space<vmem>>, vector<8x128xf32>,
    %c40 = arith.constant 40 : index
    %c0_39 = arith.constant 0 : index
    %55 = vector.load %arg7[%c40, %c0_39] : memref<64x128xf32, #tpu.memory_space<vmem>>, vector<8x128xf32>
    %cst_40 = arith.constant dense<0.000000e+00> : vector<8x128xf32>
    %56 = tpu.matmul %50, %8, %cst_40 {dimension_numbers = #tpu.dot_dimension_numbers<[1], [0], [0], [1], [0, 0, 1, 1], [], []>} : vector<8x128xbf16>, vector<128x128xbf16>, vector<8x128xf32> -> vector<8x128xf32>
    %57 = arith.addf %55, %56 : vector<8x128xf32>
    %58 = math.tanh %57 : vector<8x128xf32>
    %59 = arith.truncf %58 : vector<8x128xf32> to vector<8x128xbf16>
    %cst_41 = arith.constant dense<0.000000e+00> : vector<8x128xf32>
    %60 = tpu.matmul %59, %10, %cst_41 {dimension_numbers = #tpu.dot_dimension_numbers<[1], [0], [0], [1], [0, 0, 1, 1], [], []>} : vector<8x128xbf16>, vector<128x128xbf16>, vector<8x128xf32> -> vector<8x128xf32>
    %61 = vector.broadcast %11 : vector<1x128xf32> to vector<8x128xf32>
    %62 = arith.addf %60, %61 : vector<8x128xf32>
    %c40_42 = arith.constant 40 : index
    %c0_43 = arith.constant 0 : index
    %63 = vector.load %arg8[%c40_42, %c0_43] : memref<64x128xf32, #tpu.memory_space<vmem>>, vector<8x128xf32>
    tpu.vector_store %arg8[%c40_42, %c0_43], %62 {strides = array<i32>} : memref<64x128xf32, #tpu.memory_space<vmem>>, vector<8x128xf32>,
    %c48 = arith.constant 48 : index
    %c0_44 = arith.constant 0 : index
    %64 = vector.load %arg7[%c48, %c0_44] : memref<64x128xf32, #tpu.memory_space<vmem>>, vector<8x128xf32>
    %cst_45 = arith.constant dense<0.000000e+00> : vector<8x128xf32>
    %65 = tpu.matmul %59, %8, %cst_45 {dimension_numbers = #tpu.dot_dimension_numbers<[1], [0], [0], [1], [0, 0, 1, 1], [], []>} : vector<8x128xbf16>, vector<128x128xbf16>, vector<8x128xf32> -> vector<8x128xf32>
    %66 = arith.addf %64, %65 : vector<8x128xf32>
    %67 = math.tanh %66 : vector<8x128xf32>
    %68 = arith.truncf %67 : vector<8x128xf32> to vector<8x128xbf16>
    %cst_46 = arith.constant dense<0.000000e+00> : vector<8x128xf32>
    %69 = tpu.matmul %68, %10, %cst_46 {dimension_numbers = #tpu.dot_dimension_numbers<[1], [0], [0], [1], [0, 0, 1, 1], [], []>} : vector<8x128xbf16>, vector<128x128xbf16>, vector<8x128xf32> -> vector<8x128xf32>
    %70 = vector.broadcast %11 : vector<1x128xf32> to vector<8x128xf32>
    %71 = arith.addf %69, %70 : vector<8x128xf32>
    %c48_47 = arith.constant 48 : index
    %c0_48 = arith.constant 0 : index
    %72 = vector.load %arg8[%c48_47, %c0_48] : memref<64x128xf32, #tpu.memory_space<vmem>>, vector<8x128xf32>
    tpu.vector_store %arg8[%c48_47, %c0_48], %71 {strides = array<i32>} : memref<64x128xf32, #tpu.memory_space<vmem>>, vector<8x128xf32>,
    %c56 = arith.constant 56 : index
    %c0_49 = arith.constant 0 : index
    %73 = vector.load %arg7[%c56, %c0_49] : memref<64x128xf32, #tpu.memory_space<vmem>>, vector<8x128xf32>
    %cst_50 = arith.constant dense<0.000000e+00> : vector<8x128xf32>
    %74 = tpu.matmul %68, %8, %cst_50 {dimension_numbers = #tpu.dot_dimension_numbers<[1], [0], [0], [1], [0, 0, 1, 1], [], []>} : vector<8x128xbf16>, vector<128x128xbf16>, vector<8x128xf32> -> vector<8x128xf32>
    %75 = arith.addf %73, %74 : vector<8x128xf32>
    %76 = math.tanh %75 : vector<8x128xf32>
    %77 = arith.truncf %76 : vector<8x128xf32> to vector<8x128xbf16>
    %cst_51 = arith.constant dense<0.000000e+00> : vector<8x128xf32>
    %78 = tpu.matmul %77, %10, %cst_51 {dimension_numbers = #tpu.dot_dimension_numbers<[1], [0], [0], [1], [0, 0, 1, 1], [], []>} : vector<8x128xbf16>, vector<128x128xbf16>, vector<8x128xf32> -> vector<8x128xf32>
    %79 = vector.broadcast %11 : vector<1x128xf32> to vector<8x128xf32>
    %80 = arith.addf %78, %79 : vector<8x128xf32>
    %c56_52 = arith.constant 56 : index
    %c0_53 = arith.constant 0 : index
    %81 = vector.load %arg8[%c56_52, %c0_53] : memref<64x128xf32, #tpu.memory_space<vmem>>, vector<8x128xf32>
    tpu.vector_store %arg8[%c56_52, %c0_53], %80 {strides = array<i32>} : memref<64x128xf32, #tpu.memory_space<vmem>>, vector<8x128xf32>,
    %c2 = arith.constant 2 : index
    %c0_54 = arith.constant 0 : index
    %c0_55 = arith.constant 0 : index
    %82 = vector.load %arg2[%c2, %c0_54, %c0_55] : memref<3x128x128xbf16, #tpu.memory_space<vmem>>, vector<1x128x128xbf16>
    %83 = vector.shape_cast %82 : vector<1x128x128xbf16> to vector<128x128xbf16>
    %c0_56 = arith.constant 0 : index
    %c0_57 = arith.constant 0 : index
    %84 = vector.load %arg8[%c0_56, %c0_57] : memref<64x128xf32, #tpu.memory_space<vmem>>, vector<8x128xf32>
    %85 = math.tanh %84 : vector<8x128xf32>
    %86 = arith.truncf %85 : vector<8x128xf32> to vector<8x128xbf16>
    %c8_58 = arith.constant 8 : index
    %c0_59 = arith.constant 0 : index
    %87 = vector.load %arg8[%c8_58, %c0_59] : memref<64x128xf32, #tpu.memory_space<vmem>>, vector<8x128xf32>
    %cst_60 = arith.constant dense<0.000000e+00> : vector<8x128xf32>
    %88 = tpu.matmul %86, %83, %cst_60 {dimension_numbers = #tpu.dot_dimension_numbers<[1], [0], [0], [1], [0, 0, 1, 1], [], []>} : vector<8x128xbf16>, vector<128x128xbf16>, vector<8x128xf32> -> vector<8x128xf32>
    %89 = arith.addf %87, %88 : vector<8x128xf32>
    %90 = math.tanh %89 : vector<8x128xf32>
    %91 = arith.truncf %90 : vector<8x128xf32> to vector<8x128xbf16>
    %c16_61 = arith.constant 16 : index
    %c0_62 = arith.constant 0 : index
    %92 = vector.load %arg8[%c16_61, %c0_62] : memref<64x128xf32, #tpu.memory_space<vmem>>, vector<8x128xf32>
    %cst_63 = arith.constant dense<0.000000e+00> : vector<8x128xf32>
    %93 = tpu.matmul %91, %83, %cst_63 {dimension_numbers = #tpu.dot_dimension_numbers<[1], [0], [0], [1], [0, 0, 1, 1], [], []>} : vector<8x128xbf16>, vector<128x128xbf16>, vector<8x128xf32> -> vector<8x128xf32>
    %94 = arith.addf %92, %93 : vector<8x128xf32>
    %95 = math.tanh %94 : vector<8x128xf32>
    %96 = arith.truncf %95 : vector<8x128xf32> to vector<8x128xbf16>
    %c24_64 = arith.constant 24 : index
    %c0_65 = arith.constant 0 : index
    %97 = vector.load %arg8[%c24_64, %c0_65] : memref<64x128xf32, #tpu.memory_space<vmem>>, vector<8x128xf32>
    %cst_66 = arith.constant dense<0.000000e+00> : vector<8x128xf32>
    %98 = tpu.matmul %96, %83, %cst_66 {dimension_numbers = #tpu.dot_dimension_numbers<[1], [0], [0], [1], [0, 0, 1, 1], [], []>} : vector<8x128xbf16>, vector<128x128xbf16>, vector<8x128xf32> -> vector<8x128xf32>
    %99 = arith.addf %97, %98 : vector<8x128xf32>
    %100 = math.tanh %99 : vector<8x128xf32>
    %101 = arith.truncf %100 : vector<8x128xf32> to vector<8x128xbf16>
    %c32_67 = arith.constant 32 : index
    %c0_68 = arith.constant 0 : index
    %102 = vector.load %arg8[%c32_67, %c0_68] : memref<64x128xf32, #tpu.memory_space<vmem>>, vector<8x128xf32>
    %cst_69 = arith.constant dense<0.000000e+00> : vector<8x128xf32>
    %103 = tpu.matmul %101, %83, %cst_69 {dimension_numbers = #tpu.dot_dimension_numbers<[1], [0], [0], [1], [0, 0, 1, 1], [], []>} : vector<8x128xbf16>, vector<128x128xbf16>, vector<8x128xf32> -> vector<8x128xf32>
    %104 = arith.addf %102, %103 : vector<8x128xf32>
    %105 = math.tanh %104 : vector<8x128xf32>
    %106 = arith.truncf %105 : vector<8x128xf32> to vector<8x128xbf16>
    %c40_70 = arith.constant 40 : index
    %c0_71 = arith.constant 0 : index
    %107 = vector.load %arg8[%c40_70, %c0_71] : memref<64x128xf32, #tpu.memory_space<vmem>>, vector<8x128xf32>
    %cst_72 = arith.constant dense<0.000000e+00> : vector<8x128xf32>
    %108 = tpu.matmul %106, %83, %cst_72 {dimension_numbers = #tpu.dot_dimension_numbers<[1], [0], [0], [1], [0, 0, 1, 1], [], []>} : vector<8x128xbf16>, vector<128x128xbf16>, vector<8x128xf32> -> vector<8x128xf32>
    %109 = arith.addf %107, %108 : vector<8x128xf32>
    %110 = math.tanh %109 : vector<8x128xf32>
    %111 = arith.truncf %110 : vector<8x128xf32> to vector<8x128xbf16>
    %c48_73 = arith.constant 48 : index
    %c0_74 = arith.constant 0 : index
    %112 = vector.load %arg8[%c48_73, %c0_74] : memref<64x128xf32, #tpu.memory_space<vmem>>, vector<8x128xf32>
    %cst_75 = arith.constant dense<0.000000e+00> : vector<8x128xf32>
    %113 = tpu.matmul %111, %83, %cst_75 {dimension_numbers = #tpu.dot_dimension_numbers<[1], [0], [0], [1], [0, 0, 1, 1], [], []>} : vector<8x128xbf16>, vector<128x128xbf16>, vector<8x128xf32> -> vector<8x128xf32>
    %114 = arith.addf %112, %113 : vector<8x128xf32>
    %115 = math.tanh %114 : vector<8x128xf32>
    %116 = arith.truncf %115 : vector<8x128xf32> to vector<8x128xbf16>
    %c56_76 = arith.constant 56 : index
    %c0_77 = arith.constant 0 : index
    %117 = vector.load %arg8[%c56_76, %c0_77] : memref<64x128xf32, #tpu.memory_space<vmem>>, vector<8x128xf32>
    %cst_78 = arith.constant dense<0.000000e+00> : vector<8x128xf32>
    %118 = tpu.matmul %116, %83, %cst_78 {dimension_numbers = #tpu.dot_dimension_numbers<[1], [0], [0], [1], [0, 0, 1, 1], [], []>} : vector<8x128xbf16>, vector<128x128xbf16>, vector<8x128xf32> -> vector<8x128xf32>
    %119 = arith.addf %117, %118 : vector<8x128xf32>
    %120 = math.tanh %119 : vector<8x128xf32>
    %121 = arith.truncf %120 : vector<8x128xf32> to vector<8x128xbf16>
    %c0_79 = arith.constant 0 : index
    %c0_80 = arith.constant 0 : index
    %122 = vector.load %arg4[%c0_79, %c0_80] : memref<128x128xbf16, #tpu.memory_space<vmem>>, vector<128x128xbf16>
    %cst_81 = arith.constant dense<0.000000e+00> : vector<8x128xf32>
    %123 = tpu.matmul %121, %122, %cst_81 {dimension_numbers = #tpu.dot_dimension_numbers<[1], [0], [0], [1], [0, 0, 1, 1], [], []>} : vector<8x128xbf16>, vector<128x128xbf16>, vector<8x128xf32> -> vector<8x128xf32>
    %c0_82 = arith.constant 0 : index
    %c0_83 = arith.constant 0 : index
    %124 = vector.load %arg5[%c0_82, %c0_83] : memref<1x128xf32, #tpu.memory_space<vmem>>, vector<1x128xf32>
    %125 = vector.broadcast %124 : vector<1x128xf32> to vector<8x128xf32>
    %126 = arith.addf %123, %125 : vector<8x128xf32>
    %c0_84 = arith.constant 0 : index
    %c0_85 = arith.constant 0 : index
    %127 = vector.load %arg6[%c0_84, %c0_85] : memref<8x128xf32, #tpu.memory_space<vmem>>, vector<8x128xf32>
    tpu.vector_store %arg6[%c0_84, %c0_85], %126 {strides = array<i32>} : memref<8x128xf32, #tpu.memory_space<vmem>>, vector<8x128xf32>,
    return
  }
}

</mosaic_0001>

<bundles_post_ra>
// kernel: rnn_model_forward.1
= control target key start
LH: loop header
LB: loop body
LE: loop exit
PB: predicated region body
PF: predicated region fallthrough
CT: control target
= control target key end

     0   :  { %11 = vsyncpa [#allocation5], 0  ;;  %s1502_s0 = inlined_call_operand.vmem [shape: bf16[64,128], index: 0, kind: input, shape index: {}]   ;;  %s1503_s1 = inlined_call_operand.vmem [shape: bf16[128,128], index: 1, kind: input, shape index: {}]   ;;  %s1504_s2 = inlined_call_operand.hbm [shape: bf16[3,128,128], index: 2, kind: input, shape index: {}]   ;;  %s1505_s3 = inlined_call_operand.vmem [shape: f32[2,128], index: 3, kind: input, shape index: {}]   ;;  %s1506_s4 = inlined_call_operand.hbm [shape: bf16[128,128], index: 4, kind: input, shape index: {}]   ;;  %s1507_s5 = inlined_call_operand.vmem [shape: f32[1,128], index: 5, kind: input, shape index: {}]   ;;  %s1508_s6 = inlined_call_operand.vmem [shape: f32[8,128], index: 6, kind: output, shape index: {}]  }
   0x1   :  { %s21_s23 = sshll.u32 %s1504_s2, 4  ;;  %s22_s23 = int_to_ptr.hbm [resolvable:$true] %s21_s23 }
   0x2   :  { %12 = vsyncpa [#allocation7], 0  ;;  %s1141_s24 = smov [#allocation4]   ;;  %s36_s28 = sshll.u32 %s1506_s4, 4  ;;  %s37_s28 = int_to_ptr.hbm [resolvable:$true] %s36_s28 }
   0x3   :  { %s23_s25 = sshll.u32 %s1141_s24, 4  ;;  %s1142_s29 = smov 64   ;;  %s24_s25 = int_to_ptr.vmem [resolvable:$true] %s23_s25 }
   0x4   :  { %s1143_s30 = smov 4   ;;  %s1144_s7 = smov [#allocation6]  }
   0x5   :  { %29 = dma.hbm_to_vmem [thread:$0]  %s22_s23, 3072, %s24_s25, [#allocation5], %s1142_s29, %s1142_s29, %s1143_s30  }
   0x6   :  { %s38_s8 = sshll.u32 %s1144_s7, 4  ;;  %s39_s8 = int_to_ptr.vmem [resolvable:$true] %s38_s8 }
   0x7   :  { %44 = dma.hbm_to_vmem [thread:$0]  %s37_s28, 1024, %s39_s8, [#allocation7], %s1142_s29, %s1142_s29, %s1143_s30  }
   0x8   :  { %1137 = dma.done.wait [#allocation5], 3072  }
   0x9   :  { %1138 = vsyncadd [#allocation5], 4294964224 }
   0xa   :  { %1139 = dma.done.wait [#allocation7], 1024  }
   0xb   :  { %1140 = vsyncadd [#allocation7], 4294966272  ;;  %v1017_v0 = vld [vmem:[%s1503_s1 + $0x38] sm:$0xff]  ;;  %v1016_v1 = vld [vmem:[%s1503_s1 + $0x30] sm:$0xff] }
   0xc   :  { %153 = vmatpush.bf16.msra.mxu0 %v1017_v0  ;;  %v1192_v2 = vld [vmem:[#allocation4 + $0x78] sm:$0xff]  ;;  %v1198_v4 = vld [vmem:[#allocation4 + $0x70] sm:$0xff]  ;;  %v1015_v6 = vld [vmem:[%s1503_s1 + $0x28] sm:$0xff] }
   0xd   :  { %v1194_v3 = vld [vmem:[#allocation4 + $0x38] sm:$0xff]  ;;  %276 = vmatpush.bf16.msra.mxu1 %v1192_v2  ;;  %v1200_v5 = vld [vmem:[#allocation4 + $0x30] sm:$0xff]  ;;  %355 = vmatpush.bf16.msra.mxu3 %v1192_v2  ;;  %v1208_v7 = vld [vmem:[#allocation4 + $0x68] sm:$0xff] }
   0xe   :  { %339 = vmatpush.bf16.msra.mxu2 %v1194_v3  ;;  %v1210_v8 = vld [vmem:[#allocation4 + $0x28] sm:$0xff]  ;;  %v1014_v9 = vld [vmem:[%s1503_s1 + $0x20] sm:$0xff]  ;;  %v1013_v12 = vld [vmem:[%s1503_s1 + $0x18] sm:$0xff] }
   0xf   :  { %v1218_v10 = vld [vmem:[#allocation4 + $0x60] sm:$0xff]  ;;  %v1228_v13 = vld [vmem:[#allocation4 + $0x58] sm:$0xff]  ;;  %v1012_v15 = vld [vmem:[%s1503_s1 + $0x10] sm:$0xff] }
  0x10   :  { %154 = vmatpush.bf16.msra.mxu0 %v1016_v1  ;;  %v1220_v11 = vld [vmem:[#allocation4 + $0x20] sm:$0xff]  ;;  %v1230_v14 = vld [vmem:[#allocation4 + $0x18] sm:$0xff]  ;;  %v1011_v16 = vld [vmem:[%s1503_s1 + $0x8] sm:$0xff] }
  0x11   :  { %277 = vmatpush.bf16.msra.mxu1 %v1198_v4  ;;  %356 = vmatpush.bf16.msra.mxu3 %v1198_v4  ;;  %v1010_v17 = vld [vmem:[%s1503_s1] sm:$0xff]  ;;  %v1253_v19 = vld [vmem:[#allocation4 + $0x50] sm:$0xff]  ;;  %v1261_v21 = vld [vmem:[#allocation4 + $0x48] sm:$0xff] }
  0x12   :  { %340 = vmatpush.bf16.msra.mxu2 %v1200_v5  ;;  %v1006_v18 = vld [vmem:[%s1502_s0] sm:$0xff]  ;;  %v1255_v20 = vld [vmem:[#allocation4 + $0x10] sm:$0xff]  ;;  %v1263_v22 = vld [vmem:[#allocation4 + $0x8] sm:$0xff] }
  0x13   :  { %v1269_v23 = vld [vmem:[#allocation4 + $0x40] sm:$0xff]  ;;  %v1007_v30 = vld [vmem:[%s1502_s0 + $0x8] sm:$0xff]  ;;  %v1008_v40 = vld [vmem:[%s1502_s0 + $0x10] sm:$0xff] }
  0x14   :  { %155 = vmatpush.bf16.msra.mxu0 %v1015_v6  ;;  %v1271_v24 = vld [vmem:[#allocation4] sm:$0xff]  ;;  %v1009_v42 = vld [vmem:[%s1502_s0 + $0x18] sm:$0xff] }
  0x15   :  { %278 = vmatpush.bf16.msra.mxu1 %v1208_v7  ;;  %357 = vmatpush.bf16.msra.mxu3 %v1208_v7  ;;  %v1299_v25 = vld [vmem:[%s1505_s3] ss:$0 sm:$0xff]  ;;  %v1391_v63 = vld [vmem:[#allocation4 + $0xb8] sm:$0xff] }
  0x16   :  { %341 = vmatpush.bf16.msra.mxu2 %v1210_v8 }
  0x18   :  { %156 = vmatpush.bf16.msra.mxu0 %v1014_v9  ;;  %v1401_v9 = vld [vmem:[#allocation4 + $0xb0] sm:$0xff] }
  0x19   :  { %279 = vmatpush.bf16.msra.mxu1 %v1218_v10  ;;  %358 = vmatpush.bf16.msra.mxu3 %v1218_v10 }
  0x1a   :  { %342 = vmatpush.bf16.msra.mxu2 %v1220_v11 }
  0x1c   :  { %157 = vmatpush.bf16.msra.mxu0 %v1013_v12  ;;  %v1416_v12 = vld [vmem:[#allocation4 + $0x98] sm:$0xff] }
  0x1d   :  { %280 = vmatpush.bf16.msra.mxu1 %v1228_v13  ;;  %359 = vmatpush.bf16.msra.mxu3 %v1228_v13 }
  0x1e   :  { %343 = vmatpush.bf16.msra.mxu2 %v1230_v14 }
  0x20   :  { %158 = vmatpush.bf16.msra.mxu0 %v1012_v15  ;;  %v1429_v15 = vld [vmem:[#allocation4 + $0x80] sm:$0xff] }
  0x21   :  { %281 = vmatpush.bf16.msra.mxu1 %v1253_v19  ;;  %360 = vmatpush.bf16.msra.mxu3 %v1253_v19 }
  0x22   :  { %344 = vmatpush.bf16.msra.mxu2 %v1255_v20 }
  0x24   :  { %159 = vmatpush.bf16.msra.mxu0 %v1011_v16 }
  0x25   :  { %282 = vmatpush.bf16.msra.mxu1 %v1261_v21  ;;  %361 = vmatpush.bf16.msra.mxu3 %v1261_v21 }
  0x26   :  { %345 = vmatpush.bf16.msra.mxu2 %v1263_v22 }
  0x28   :  { %160 = vmatpush.bf16.msra.mxu0 %v1010_v17 }
  0x29   :  { %283 = vmatpush.bf16.msra.mxu1 %v1269_v23  ;;  %362 = vmatpush.bf16.msra.mxu3 %v1269_v23 }
  0x2a   :  { %346 = vmatpush.bf16.msra.mxu2 %v1271_v24 }
  0x2b   :  { %161 = vmatmul.bf16.vlgmr.msra.gmra.mxu0 %v1006_v18 }
  0x2c   :  { %417 = vmatpush.bf16.msrb.mxu0 %v1192_v2 }
  0x2d   :  { %370 = vmatpush.bf16.msrb.mxu1 %v1194_v3  ;;  %401 = vmatpush.bf16.msrb.mxu3 %v1194_v3 }
  0x2e   :  { %386 = vmatpush.bf16.msrb.mxu2 %v1192_v2 }
  0x30   :  { %418 = vmatpush.bf16.msrb.mxu0 %v1198_v4 }
  0x31   :  { %371 = vmatpush.bf16.msrb.mxu1 %v1200_v5  ;;  %402 = vmatpush.bf16.msrb.mxu3 %v1200_v5 }
  0x32   :  { %387 = vmatpush.bf16.msrb.mxu2 %v1198_v4 }
  0x34   :  { %419 = vmatpush.bf16.msrb.mxu0 %v1208_v7 }
  0x35   :  { %372 = vmatpush.bf16.msrb.mxu1 %v1210_v8  ;;  %403 = vmatpush.bf16.msrb.mxu3 %v1210_v8 }
  0x36   :  { %388 = vmatpush.bf16.msrb.mxu2 %v1208_v7 }
  0x38   :  { %420 = vmatpush.bf16.msrb.mxu0 %v1218_v10 }
  0x39   :  { %373 = vmatpush.bf16.msrb.mxu1 %v1220_v11  ;;  %404 = vmatpush.bf16.msrb.mxu3 %v1220_v11 }
  0x3a   :  { %389 = vmatpush.bf16.msrb.mxu2 %v1218_v10 }
  0x3b   :  { %166 = vmatmul.bf16.gmra.mxu0 %v1007_v30 }
  0x3c   :  { %421 = vmatpush.bf16.msrb.mxu0 %v1228_v13 }
  0x3d   :  { %374 = vmatpush.bf16.msrb.mxu1 %v1230_v14  ;;  %405 = vmatpush.bf16.msrb.mxu3 %v1230_v14 }
  0x3e   :  { %390 = vmatpush.bf16.msrb.mxu2 %v1228_v13 }
  0x40   :  { %422 = vmatpush.bf16.msrb.mxu0 %v1253_v19 }
  0x41   :  { %375 = vmatpush.bf16.msrb.mxu1 %v1255_v20  ;;  %406 = vmatpush.bf16.msrb.mxu3 %v1255_v20 }
  0x42   :  { %391 = vmatpush.bf16.msrb.mxu2 %v1253_v19 }
  0x44   :  { %423 = vmatpush.bf16.msrb.mxu0 %v1261_v21 }
  0x45   :  { %376 = vmatpush.bf16.msrb.mxu1 %v1263_v22  ;;  %407 = vmatpush.bf16.msrb.mxu3 %v1263_v22 }
  0x46   :  { %392 = vmatpush.bf16.msrb.mxu2 %v1261_v21 }
  0x48   :  { %424 = vmatpush.bf16.msrb.mxu0 %v1269_v23 }
  0x49   :  { %377 = vmatpush.bf16.msrb.mxu1 %v1271_v24  ;;  %408 = vmatpush.bf16.msrb.mxu3 %v1271_v24 }
  0x4a   :  { %393 = vmatpush.bf16.msrb.mxu2 %v1269_v23 }
  0x4b   :  { %171 = vmatmul.bf16.gmra.mxu0 %v1008_v40 }
  0x4c   :  { %479 = vmatpush.bf16.msra.mxu0 %v1192_v2 }
  0x50   :  { %480 = vmatpush.bf16.msra.mxu0 %v1198_v4 }
  0x54   :  { %481 = vmatpush.bf16.msra.mxu0 %v1208_v7 }
  0x58   :  { %482 = vmatpush.bf16.msra.mxu0 %v1218_v10 }
  0x5b   :  { %176 = vmatmul.bf16.gmra.mxu0 %v1009_v42 }
  0x5c   :  { %483 = vmatpush.bf16.msra.mxu0 %v1228_v13 }
  0x60   :  { %484 = vmatpush.bf16.msra.mxu0 %v1253_v19 }
  0x64   :  { %485 = vmatpush.bf16.msra.mxu0 %v1261_v21 }
  0x68   :  { %486 = vmatpush.bf16.msra.mxu0 %v1269_v23 }
  0xa8   :  { %v162_v26 = vpop.f32.mrf.mxu0 }
  0xa9   :  { %v163_v27 = vadd.f32 %v1299_v25, %v162_v26 }
  0xab   :  { %1057 = vtanh.f32 %v163_v27 }
  0xb0   :  { %v164_v32 = vpop.f32.mrf.mxu0 }
  0xb1   :  { %v1058_v28 = vpop.eup %1057  ;;  %v165_v33 = vadd.f32 %v1299_v25, %v164_v32 }
  0xb2   :  { %v226_v29 = vpack.c.bf16 %v1058_v28, %v1058_v28 }
  0xb4   :  { %284 = vmatmul.bf16.vlgmr.msra.gmra.mxu1 %v226_v29  ;;  %347 = vmatmul.bf16.vlgmr.msra.gmra.mxu2 %v226_v29 }
  0xb5   :  { %432 = vmatpush.bf16.msra.mxu1 %v1194_v3  ;;  %448 = vmatpush.bf16.msra.mxu2 %v1192_v2 }
  0xb8   :  { %v167_v41 = vpop.f32.mrf.mxu0 }
  0xb9   :  { %433 = vmatpush.bf16.msra.mxu1 %v1200_v5  ;;  %449 = vmatpush.bf16.msra.mxu2 %v1198_v4  ;;  %v168_v43 = vadd.f32 %v1299_v25, %v167_v41 }
  0xbd   :  { %434 = vmatpush.bf16.msra.mxu1 %v1210_v8  ;;  %450 = vmatpush.bf16.msra.mxu2 %v1208_v7 }
  0xc0   :  { %v169_v51 = vpop.f32.mrf.mxu0 }
  0xc1   :  { %435 = vmatpush.bf16.msra.mxu1 %v1220_v11  ;;  %451 = vmatpush.bf16.msra.mxu2 %v1218_v10  ;;  %v170_v52 = vadd.f32 %v1299_v25, %v169_v51 }
  0xc5   :  { %436 = vmatpush.bf16.msra.mxu1 %v1230_v14  ;;  %452 = vmatpush.bf16.msra.mxu2 %v1228_v13 }
  0xc8   :  { %v172_v60 = vpop.f32.mrf.mxu0 }
  0xc9   :  { %437 = vmatpush.bf16.msra.mxu1 %v1255_v20  ;;  %453 = vmatpush.bf16.msra.mxu2 %v1253_v19  ;;  %v173_v1 = vadd.f32 %v1299_v25, %v172_v60 }
  0xcd   :  { %438 = vmatpush.bf16.msra.mxu1 %v1263_v22  ;;  %454 = vmatpush.bf16.msra.mxu2 %v1261_v21 }
  0xd0   :  { %v174_v61 = vpop.f32.mrf.mxu0 }
  0xd1   :  { %439 = vmatpush.bf16.msra.mxu1 %v1271_v24  ;;  %455 = vmatpush.bf16.msra.mxu2 %v1269_v23  ;;  %v175_v16 = vadd.f32 %v1299_v25, %v174_v61 }
  0xd8   :  { %v1389_v62 = vpop.f32.mrf.mxu0 }
  0xd9   :  { %v178_v29 = vadd.f32 %v1299_v25, %v1389_v62 }
  0xe0   :  { %v1394_v0 = vpop.f32.mrf.mxu0 }
 0x131   :  { %v1334_v31 = vpop.f32.mrf.mxu1 }
 0x137   :  { %v348_v34 = vpop.f32.mrf.mxu2 }
 0x138   :  { %v352_v35 = vadd.f32 %v348_v34, %v165_v33 }
 0x139   :  { %v287_v36 = vpop.f32.mrf.mxu1 }
 0x13a   :  { %1059 = vtanh.f32 %v352_v35 }
 0x13f   :  { %v350_v37 = vpop.f32.mrf.mxu2 }
 0x140   :  { %v1060_v38 = vpop.eup %1059 }
 0x141   :  { %v354_v39 = vpack.c.bf16 %v1060_v38, %v1060_v38 }
 0x143   :  { %363 = vmatmul.bf16.vlgmr.msra.gmra.mxu3 %v354_v39  ;;  %378 = vmatmul.bf16.vlgmr.msrb.gmra.mxu1 %v354_v39 }
 0x144   :  { %463 = vmatpush.bf16.msra.mxu3 %v1194_v3  ;;  %494 = vmatpush.bf16.msrb.mxu1 %v1194_v3 }
 0x148   :  { %464 = vmatpush.bf16.msra.mxu3 %v1200_v5  ;;  %495 = vmatpush.bf16.msrb.mxu1 %v1200_v5 }
 0x14c   :  { %465 = vmatpush.bf16.msra.mxu3 %v1210_v8  ;;  %496 = vmatpush.bf16.msrb.mxu1 %v1210_v8 }
 0x150   :  { %466 = vmatpush.bf16.msra.mxu3 %v1220_v11  ;;  %497 = vmatpush.bf16.msrb.mxu1 %v1220_v11 }
 0x154   :  { %467 = vmatpush.bf16.msra.mxu3 %v1230_v14  ;;  %498 = vmatpush.bf16.msrb.mxu1 %v1230_v14 }
 0x158   :  { %468 = vmatpush.bf16.msra.mxu3 %v1255_v20  ;;  %499 = vmatpush.bf16.msrb.mxu1 %v1255_v20 }
 0x15c   :  { %469 = vmatpush.bf16.msra.mxu3 %v1263_v22  ;;  %500 = vmatpush.bf16.msrb.mxu1 %v1263_v22 }
 0x160   :  { %470 = vmatpush.bf16.msra.mxu3 %v1271_v24  ;;  %501 = vmatpush.bf16.msrb.mxu1 %v1271_v24 }
 0x1c0   :  { %v379_v44 = vpop.f32.mrf.mxu1 }
 0x1c1   :  { %v383_v45 = vadd.f32 %v379_v44, %v168_v43  ;;  %v180_v43 = vadd.f32 %v1299_v25, %v1394_v0 }
 0x1c3   :  { %1061 = vtanh.f32 %v383_v45 }
 0x1c6   :  { %v1360_v46 = vpop.f32.mrf.mxu3 }
 0x1c8   :  { %v381_v47 = vpop.f32.mrf.mxu1 }
 0x1c9   :  { %v1062_v48 = vpop.eup %1061 }
 0x1ca   :  { %v385_v49 = vpack.c.bf16 %v1062_v48, %v1062_v48 }
 0x1cc   :  { %394 = vmatmul.bf16.vlgmr.msrb.gmra.mxu2 %v385_v49  ;;  %409 = vmatmul.bf16.vlgmr.msrb.gmra.mxu3 %v385_v49 }
 0x1cd   :  { %510 = vmatpush.bf16.msrb.mxu2 %v1192_v2  ;;  %525 = vmatpush.bf16.msrb.mxu3 %v1194_v3 }
 0x1ce   :  { %v366_v50 = vpop.f32.mrf.mxu3 }
 0x1d1   :  { %511 = vmatpush.bf16.msrb.mxu2 %v1198_v4  ;;  %526 = vmatpush.bf16.msrb.mxu3 %v1200_v5 }
 0x1d5   :  { %512 = vmatpush.bf16.msrb.mxu2 %v1208_v7  ;;  %527 = vmatpush.bf16.msrb.mxu3 %v1210_v8 }
 0x1d9   :  { %513 = vmatpush.bf16.msrb.mxu2 %v1218_v10  ;;  %528 = vmatpush.bf16.msrb.mxu3 %v1220_v11  ;;  %v1411_v11 = vld [vmem:[#allocation4 + $0xa0] sm:$0xff] }
 0x1dd   :  { %514 = vmatpush.bf16.msrb.mxu2 %v1228_v13  ;;  %529 = vmatpush.bf16.msrb.mxu3 %v1230_v14  ;;  %v1424_v14 = vld [vmem:[#allocation4 + $0x88] sm:$0xff] }
 0x1e1   :  { %515 = vmatpush.bf16.msrb.mxu2 %v1253_v19  ;;  %530 = vmatpush.bf16.msrb.mxu3 %v1255_v20 }
 0x1e5   :  { %516 = vmatpush.bf16.msrb.mxu2 %v1261_v21  ;;  %531 = vmatpush.bf16.msrb.mxu3 %v1263_v22 }
 0x1e9   :  { %517 = vmatpush.bf16.msrb.mxu2 %v1269_v23  ;;  %532 = vmatpush.bf16.msrb.mxu3 %v1271_v24 }
 0x24f   :  { %v1379_v53 = vpop.f32.mrf.mxu2  ;;  %v410_v54 = vpop.f32.mrf.mxu3 }
 0x250   :  { %v414_v55 = vadd.f32 %v410_v54, %v170_v52 }
 0x252   :  { %1063 = vtanh.f32 %v414_v55 }
 0x257   :  { %v397_v56 = vpop.f32.mrf.mxu2  ;;  %v412_v57 = vpop.f32.mrf.mxu3 }
 0x258   :  { %v1064_v58 = vpop.eup %1063 }
 0x259   :  { %v416_v59 = vpack.c.bf16 %v1064_v58, %v1064_v58 }
 0x25b   :  { %425 = vmatmul.bf16.vlgmr.msrb.gmra.mxu0 %v416_v59  ;;  %440 = vmatmul.bf16.vlgmr.msra.gmra.mxu1 %v416_v59 }
 0x25c   :  { %541 = vmatpush.bf16.msrb.mxu0 %v1192_v2  ;;  %624 = vmatpush.bf16.msra.mxu1 %v1391_v63 }
 0x260   :  { %542 = vmatpush.bf16.msrb.mxu0 %v1198_v4  ;;  %625 = vmatpush.bf16.msra.mxu1 %v1401_v9 }
 0x264   :  { %543 = vmatpush.bf16.msrb.mxu0 %v1208_v7 }
 0x268   :  { %544 = vmatpush.bf16.msrb.mxu0 %v1218_v10  ;;  %v1406_v10 = vld [vmem:[#allocation4 + $0xa8] sm:$0xff] }
 0x269   :  { %626 = vmatpush.bf16.msra.mxu1 %v1406_v10 }
 0x26c   :  { %545 = vmatpush.bf16.msrb.mxu0 %v1228_v13  ;;  %v1419_v13 = vld [vmem:[#allocation4 + $0x90] sm:$0xff] }
 0x26d   :  { %627 = vmatpush.bf16.msra.mxu1 %v1411_v11 }
 0x270   :  { %546 = vmatpush.bf16.msrb.mxu0 %v1253_v19 }
 0x271   :  { %628 = vmatpush.bf16.msra.mxu1 %v1416_v12 }
 0x274   :  { %547 = vmatpush.bf16.msrb.mxu0 %v1261_v21 }
 0x275   :  { %629 = vmatpush.bf16.msra.mxu1 %v1419_v13 }
 0x278   :  { %548 = vmatpush.bf16.msrb.mxu0 %v1269_v23  ;;  %v1442_v23 = vld [vmem:[%s1505_s3 + $0x1] ss:$0 sm:$0xff] }
 0x279   :  { %630 = vmatpush.bf16.msra.mxu1 %v1424_v14  ;;  %v286_v26 = vadd.f32 %v1442_v23, %v1334_v31  ;;  %v365_v37 = vadd.f32 %v1442_v23, %v1360_v46  ;;  %v396_v51 = vadd.f32 %v1442_v23, %v1379_v53 }
 0x27d   :  { %631 = vmatpush.bf16.msra.mxu1 %v1429_v15 }
 0x2d8   :  { %v1397_v2 = vpop.f32.mrf.mxu0  ;;  %v441_v3 = vpop.f32.mrf.mxu1 }
 0x2d9   :  { %v445_v4 = vadd.f32 %v441_v3, %v173_v1  ;;  %v427_v59 = vadd.f32 %v1442_v23, %v1397_v2 }
 0x2db   :  { %1065 = vtanh.f32 %v445_v4 }
 0x2e0   :  { %v428_v5 = vpop.f32.mrf.mxu0  ;;  %v443_v6 = vpop.f32.mrf.mxu1 }
 0x2e1   :  { %v1066_v7 = vpop.eup %1065 }
 0x2e2   :  { %v447_v8 = vpack.c.bf16 %v1066_v7, %v1066_v7 }
 0x2e4   :  { %456 = vmatmul.bf16.vlgmr.msra.gmra.mxu2 %v447_v8  ;;  %471 = vmatmul.bf16.vlgmr.msra.gmra.mxu3 %v447_v8 }
 0x2e5   :  { %641 = vmatpush.bf16.msra.mxu2 %v1391_v63  ;;  %658 = vmatpush.bf16.msra.mxu3 %v1391_v63 }
 0x2e9   :  { %642 = vmatpush.bf16.msra.mxu2 %v1401_v9  ;;  %659 = vmatpush.bf16.msra.mxu3 %v1401_v9 }
 0x2ed   :  { %643 = vmatpush.bf16.msra.mxu2 %v1406_v10  ;;  %660 = vmatpush.bf16.msra.mxu3 %v1406_v10 }
 0x2f1   :  { %644 = vmatpush.bf16.msra.mxu2 %v1411_v11  ;;  %661 = vmatpush.bf16.msra.mxu3 %v1411_v11 }
 0x2f5   :  { %645 = vmatpush.bf16.msra.mxu2 %v1416_v12  ;;  %662 = vmatpush.bf16.msra.mxu3 %v1416_v12 }
 0x2f9   :  { %646 = vmatpush.bf16.msra.mxu2 %v1419_v13  ;;  %663 = vmatpush.bf16.msra.mxu3 %v1419_v13 }
 0x2fd   :  { %647 = vmatpush.bf16.msra.mxu2 %v1424_v14  ;;  %664 = vmatpush.bf16.msra.mxu3 %v1424_v14 }
 0x301   :  { %648 = vmatpush.bf16.msra.mxu2 %v1429_v15  ;;  %665 = vmatpush.bf16.msra.mxu3 %v1429_v15 }
 0x367   :  { %v1437_v17 = vpop.f32.mrf.mxu2  ;;  %v472_v18 = vpop.f32.mrf.mxu3 }
 0x368   :  { %v476_v19 = vadd.f32 %v472_v18, %v175_v16  ;;  %v458_v53 = vadd.f32 %v1442_v23, %v1437_v17  ;;  %v1045_v16 = vld [vmem:[#allocation6 + $0x18] sm:$0xff] }
 0x36a   :  { %1067 = vtanh.f32 %v476_v19 }
 0x36b   :  { %1069 = vtanh.f32 %v286_v26  ;;  %v1043_v26 = vld [vmem:[#allocation6 + $0x8] sm:$0xff] }
 0x36f   :  { %v459_v20 = vpop.f32.mrf.mxu2  ;;  %v474_v21 = vpop.f32.mrf.mxu3 }
 0x370   :  { %v1068_v22 = vpop.eup %1067 }
 0x371   :  { %v478_v24 = vpack.c.bf16 %v1068_v22, %v1068_v22  ;;  %v1070_v27 = vpop.eup %1069 }
 0x372   :  { %v574_v28 = vpack.c.bf16 %v1070_v27, %v1070_v27  ;;  %v1042_v27 = vld [vmem:[#allocation6] sm:$0xff] }
 0x373   :  { %487 = vmatmul.bf16.vlgmr.msra.gmra.mxu0 %v478_v24  ;;  %502 = vmatmul.bf16.vlgmr.msrb.gmra.mxu1 %v478_v24  ;;  %v1044_v24 = vld [vmem:[#allocation6 + $0x10] sm:$0xff] }
 0x374   :  { %675 = vmatpush.bf16.msra.mxu0 %v1391_v63  ;;  %692 = vmatpush.bf16.msrb.mxu1 %v1391_v63 }
 0x378   :  { %676 = vmatpush.bf16.msra.mxu0 %v1401_v9  ;;  %693 = vmatpush.bf16.msrb.mxu1 %v1401_v9 }
 0x37c   :  { %677 = vmatpush.bf16.msra.mxu0 %v1406_v10  ;;  %694 = vmatpush.bf16.msrb.mxu1 %v1406_v10 }
 0x380   :  { %678 = vmatpush.bf16.msra.mxu0 %v1411_v11  ;;  %695 = vmatpush.bf16.msrb.mxu1 %v1411_v11 }
 0x383   :  { %632 = vmatmul.bf16.vlgmr.msra.gmra.mxu1 %v574_v28 }
 0x384   :  { %679 = vmatpush.bf16.msra.mxu0 %v1416_v12  ;;  %696 = vmatpush.bf16.msrb.mxu1 %v1416_v12 }
 0x388   :  { %680 = vmatpush.bf16.msra.mxu0 %v1419_v13  ;;  %697 = vmatpush.bf16.msrb.mxu1 %v1419_v13 }
 0x38c   :  { %681 = vmatpush.bf16.msra.mxu0 %v1424_v14  ;;  %698 = vmatpush.bf16.msrb.mxu1 %v1424_v14 }
 0x390   :  { %682 = vmatpush.bf16.msra.mxu0 %v1429_v15  ;;  %699 = vmatpush.bf16.msrb.mxu1 %v1429_v15 }
 0x3f0   :  { %v1464_v30 = vpop.f32.mrf.mxu0  ;;  %v503_v31 = vpop.f32.mrf.mxu1 }
 0x3f1   :  { %v507_v32 = vadd.f32 %v503_v31, %v178_v29  ;;  %v489_v2 = vadd.f32 %v1442_v23, %v1464_v30 }
 0x3f3   :  { %1071 = vtanh.f32 %v507_v32 }
 0x3f8   :  { %v490_v33 = vpop.f32.mrf.mxu0  ;;  %v505_v34 = vpop.f32.mrf.mxu1 }
 0x3f9   :  { %v1072_v35 = vpop.eup %1071  ;;  %v1056_v34 = vld [vmem:[%s1507_s5] ss:$0 sm:$0xff] }
 0x3fa   :  { %v509_v36 = vpack.c.bf16 %v1072_v35, %v1072_v35 }
 0x3fc   :  { %518 = vmatmul.bf16.vlgmr.msrb.gmra.mxu2 %v509_v36  ;;  %533 = vmatmul.bf16.vlgmr.msrb.gmra.mxu3 %v509_v36 }
 0x3fd   :  { %709 = vmatpush.bf16.msrb.mxu2 %v1391_v63  ;;  %726 = vmatpush.bf16.msrb.mxu3 %v1391_v63 }
 0x400   :  { %v633_v38 = vpop.f32.mrf.mxu1 }
 0x401   :  { %v637_v39 = vadd.f32 %v633_v38, %v365_v37  ;;  %710 = vmatpush.bf16.msrb.mxu2 %v1401_v9  ;;  %727 = vmatpush.bf16.msrb.mxu3 %v1401_v9 }
 0x403   :  { %1073 = vtanh.f32 %v637_v39 }
 0x405   :  { %711 = vmatpush.bf16.msrb.mxu2 %v1406_v10  ;;  %728 = vmatpush.bf16.msrb.mxu3 %v1406_v10 }
 0x408   :  { %v635_v40 = vpop.f32.mrf.mxu1 }
 0x409   :  { %v1074_v41 = vpop.eup %1073  ;;  %712 = vmatpush.bf16.msrb.mxu2 %v1411_v11  ;;  %729 = vmatpush.bf16.msrb.mxu3 %v1411_v11 }
 0x40a   :  { %v639_v42 = vpack.c.bf16 %v1074_v41, %v1074_v41 }
 0x40c   :  { %649 = vmatmul.bf16.vlgmr.msra.gmra.mxu2 %v639_v42 }
 0x40d   :  { %713 = vmatpush.bf16.msrb.mxu2 %v1416_v12  ;;  %730 = vmatpush.bf16.msrb.mxu3 %v1416_v12  ;;  %v1049_v12 = vld [vmem:[#allocation6 + $0x38] sm:$0xff] }
 0x411   :  { %714 = vmatpush.bf16.msrb.mxu2 %v1419_v13  ;;  %731 = vmatpush.bf16.msrb.mxu3 %v1419_v13  ;;  %v1048_v13 = vld [vmem:[#allocation6 + $0x30] sm:$0xff] }
 0x415   :  { %715 = vmatpush.bf16.msrb.mxu2 %v1424_v14  ;;  %732 = vmatpush.bf16.msrb.mxu3 %v1424_v14  ;;  %v1047_v14 = vld [vmem:[#allocation6 + $0x28] sm:$0xff] }
 0x419   :  { %716 = vmatpush.bf16.msrb.mxu2 %v1429_v15  ;;  %733 = vmatpush.bf16.msrb.mxu3 %v1429_v15  ;;  %v1046_v15 = vld [vmem:[#allocation6 + $0x20] sm:$0xff] }
 0x47f   :  { %v519_v44 = vpop.f32.mrf.mxu2  ;;  %v534_v45 = vpop.f32.mrf.mxu3 }
 0x480   :  { %v538_v46 = vadd.f32 %v534_v45, %v180_v43  ;;  %v520_v17 = vadd.f32 %v1442_v23, %v519_v44 }
 0x482   :  { %1075 = vtanh.f32 %v538_v46 }
 0x487   :  { %v521_v47 = vpop.f32.mrf.mxu2  ;;  %v536_v48 = vpop.f32.mrf.mxu3 }
 0x488   :  { %v1076_v49 = vpop.eup %1075 }
 0x489   :  { %v540_v50 = vpack.c.bf16 %v1076_v49, %v1076_v49 }
 0x48b   :  { %549 = vmatmul.bf16.vlgmr.msrb.gmra.mxu0 %v540_v50 }
 0x48c   :  { %810 = vmatpush.bf16.msrb.mxu0 %v1049_v12 }
 0x48f   :  { %v650_v52 = vpop.f32.mrf.mxu2 }
 0x490   :  { %v654_v54 = vadd.f32 %v650_v52, %v396_v51  ;;  %811 = vmatpush.bf16.msrb.mxu0 %v1048_v13 }
 0x492   :  { %1077 = vtanh.f32 %v654_v54 }
 0x494   :  { %812 = vmatpush.bf16.msrb.mxu0 %v1047_v14 }
 0x497   :  { %v652_v55 = vpop.f32.mrf.mxu2 }
 0x498   :  { %v1078_v56 = vpop.eup %1077  ;;  %813 = vmatpush.bf16.msrb.mxu0 %v1046_v15 }
 0x499   :  { %v656_v57 = vpack.c.bf16 %v1078_v56, %v1078_v56 }
 0x49b   :  { %666 = vmatmul.bf16.vlgmr.msra.gmra.mxu3 %v656_v57 }
 0x49c   :  { %814 = vmatpush.bf16.msrb.mxu0 %v1045_v16 }
 0x4a0   :  { %815 = vmatpush.bf16.msrb.mxu0 %v1044_v24 }
 0x4a4   :  { %816 = vmatpush.bf16.msrb.mxu0 %v1043_v26 }
 0x4a8   :  { %817 = vmatpush.bf16.msrb.mxu0 %v1042_v27 }
 0x508   :  { %v550_v25 = vpop.f32.mrf.mxu0 }
 0x509   :  { %v551_v28 = vadd.f32 %v1442_v23, %v550_v25 }
 0x510   :  { %v552_v58 = vpop.f32.mrf.mxu0 }
 0x51e   :  { %v667_v60 = vpop.f32.mrf.mxu3 }
 0x51f   :  { %v671_v61 = vadd.f32 %v667_v60, %v427_v59 }
 0x521   :  { %1079 = vtanh.f32 %v671_v61 }
 0x526   :  { %v669_v62 = vpop.f32.mrf.mxu3 }
 0x527   :  { %v1080_v63 = vpop.eup %1079 }
 0x528   :  { %v673_v0 = vpack.c.bf16 %v1080_v63, %v1080_v63 }
 0x52a   :  { %683 = vmatmul.bf16.vlgmr.msra.gmra.mxu0 %v673_v0 }
 0x5a7   :  { %v684_v1 = vpop.f32.mrf.mxu0 }
 0x5a8   :  { %v688_v3 = vadd.f32 %v684_v1, %v458_v53 }
 0x5aa   :  { %1081 = vtanh.f32 %v688_v3 }
 0x5af   :  { %v686_v4 = vpop.f32.mrf.mxu0 }
 0x5b0   :  { %v1082_v5 = vpop.eup %1081 }
 0x5b1   :  { %v690_v6 = vpack.c.bf16 %v1082_v5, %v1082_v5 }
 0x5b3   :  { %700 = vmatmul.bf16.vlgmr.msrb.gmra.mxu1 %v690_v6 }
 0x630   :  { %v701_v7 = vpop.f32.mrf.mxu1 }
 0x631   :  { %v705_v8 = vadd.f32 %v701_v7, %v489_v2 }
 0x633   :  { %1083 = vtanh.f32 %v705_v8 }
 0x638   :  { %v703_v9 = vpop.f32.mrf.mxu1 }
 0x639   :  { %v1084_v10 = vpop.eup %1083 }
 0x63a   :  { %v707_v11 = vpack.c.bf16 %v1084_v10, %v1084_v10 }
 0x63c   :  { %717 = vmatmul.bf16.vlgmr.msrb.gmra.mxu2 %v707_v11 }
 0x6bf   :  { %v718_v18 = vpop.f32.mrf.mxu2 }
 0x6c0   :  { %v722_v19 = vadd.f32 %v718_v18, %v520_v17 }
 0x6c2   :  { %1085 = vtanh.f32 %v722_v19 }
 0x6c7   :  { %v720_v20 = vpop.f32.mrf.mxu2 }
 0x6c8   :  { %v1086_v21 = vpop.eup %1085 }
 0x6c9   :  { %v724_v22 = vpack.c.bf16 %v1086_v21, %v1086_v21 }
 0x6cb   :  { %734 = vmatmul.bf16.vlgmr.msrb.gmra.mxu3 %v724_v22 }
 0x74e   :  { %v735_v29 = vpop.f32.mrf.mxu3 }
 0x74f   :  { %v739_v30 = vadd.f32 %v735_v29, %v551_v28 }
 0x751   :  { %1087 = vtanh.f32 %v739_v30 }
 0x756   :  { %v737_v31 = vpop.f32.mrf.mxu3 }
 0x757   :  { %v1088_v32 = vpop.eup %1087 }
 0x758   :  { %v741_v33 = vpack.c.bf16 %v1088_v32, %v1088_v32 }
 0x75a   :  { %818 = vmatmul.bf16.vlgmr.msrb.gmra.mxu0 %v741_v33 }
 0x7d7   :  { %v819_v35 = vpop.f32.mrf.mxu0 }
 0x7d8   :  { %v820_v36 = vadd.f32 %v1056_v34, %v819_v35 }
 0x7da   :  { %823 = vst [vmem:[%s1508_s6] sm:$0xff] %v820_v36 }
 0x7df   :  { %v821_v37 = vpop.f32.mrf.mxu0 }
 0x7e0   :  { %828 = vsyncpa [#allocation5], 1 }
 0x7e1   :  { %829 = vsyncpa [#allocation7], 1 }

</bundles_post_ra>
